<compile_context>
chip_gen: v6e
topology: v6e:2x2x1
jax: 0.10.0
libtpu: 0.0.40
codegen_flags: <defaults>
</compile_context>

<pallas_src>
import functools

import jax
import jax.numpy as jnp
from jax.experimental import pallas as pl
from jax.experimental.pallas import tpu as pltpu

SUBLANE_BF16 = 16      # bf16 packs 16 rows per sublane group
H_CHUNK_MAX = 512      # max hidden-slab width processed at once in the kernel


def _round_up(x, m):
    return ((x + m - 1) // m) * m


def _pad_feature(d):
    # 256-aligned tiles fill the v6e/v7x 2x256x256 MXU; 128 for small dims.
    base = 256 if d >= 256 else 128
    return _round_up(d, base)


def _choose_batch_tiling(B, block_b):
    """Pick (TB, Bp): 16-row-aligned tiles, balanced so padding waste stays
    small and there are >=2 grid steps when B allows (v7x has 2 TCs)."""
    n_steps = max(1, pl.cdiv(B, block_b))
    if n_steps == 1 and B > SUBLANE_BF16:
        n_steps = 2
    TB = _round_up(pl.cdiv(B, n_steps), SUBLANE_BF16)
    Bp = _round_up(B, TB)
    return TB, Bp


def simplenet_kernel(x_ref, w1_ref, b1_ref, w2_ref, b2_ref, out_ref, *,
                     h_chunk, n_h_chunks, compute_dtype):
    # Activations arrive as f32; cast to the MXU dtype in VMEM (no extra
    # wrapper-side HBM pass).
    x = x_ref[...].astype(compute_dtype)

    def h_slab(c, acc):
        off = pl.multiple_of(c * h_chunk, h_chunk)
        # fc1 slab: (TB, D_in) @ (D_in, h_chunk), f32 accumulation on the MXU.
        h = jnp.dot(x, w1_ref[:, pl.ds(off, h_chunk)],
                    preferred_element_type=jnp.float32)
        h = jnp.maximum(h + b1_ref[:, pl.ds(off, h_chunk)], 0.0)  # bias+ReLU f32
        # Partial fc2: accumulate (TB, h_chunk) @ (h_chunk, Cp) into f32 acc.
        return acc + jnp.dot(h.astype(compute_dtype),
                             w2_ref[pl.ds(off, h_chunk), :],
                             preferred_element_type=jnp.float32)

    acc = jnp.zeros(out_ref.shape, jnp.float32)
    if n_h_chunks == 1:
        acc = h_slab(0, acc)
    else:
        acc = jax.lax.fori_loop(0, n_h_chunks, h_slab, acc, unroll=True)
    out_ref[...] = (acc + b2_ref[...]).astype(out_ref.dtype)


def prepare_simplenet_params(w1, b1, w2, b2, *, compute_dtype=jnp.bfloat16):
    """Pad / cast weights once (hoisted out of the per-forward path).

    w1: [D_in, H], b1: [H], w2: [H, C], b2: [C]  ([in, out] layout, i.e.
    transposed relative to nn.Linear's [out, in] weight storage).
    Zero padding is exact: padded hidden columns give relu(0)=0 which hit zero
    rows of W2; padded output columns are sliced off in the wrapper.
    """
    D_in, H = w1.shape
    C = w2.shape[1]

    Hp = _pad_feature(H)
    Cp = _pad_feature(C)
    if Hp > H_CHUNK_MAX:
        h_chunk = H_CHUNK_MAX
        Hp = _round_up(Hp, h_chunk)   # make hidden slabs divide evenly
    else:
        h_chunk = Hp

    w1p = jnp.pad(w1, ((0, 0), (0, Hp - H))).astype(compute_dtype)
    b1p = jnp.pad(b1, (0, Hp - H)).reshape(1, Hp).astype(jnp.float32)
    w2p = jnp.pad(w2, ((0, Hp - H), (0, Cp - C))).astype(compute_dtype)
    b2p = jnp.pad(b2, (0, Cp - C)).reshape(1, Cp).astype(jnp.float32)

    meta = dict(D_in=D_in, H=H, C=C, Hp=Hp, Cp=Cp,
                h_chunk=h_chunk, n_h_chunks=Hp // h_chunk,
                compute_dtype=compute_dtype)
    return (w1p, b1p, w2p, b2p), meta


def simplenet_forward(x, padded_params, meta, *, block_b=512):
    """relu(x @ w1 + b1) @ w2 + b2 for x: [B, D_in] -> [B, C] (f32)."""
    w1p, b1p, w2p, b2p = padded_params
    D_in, C = meta["D_in"], meta["C"]
    Hp, Cp = meta["Hp"], meta["Cp"]
    h_chunk, n_h_chunks = meta["h_chunk"], meta["n_h_chunks"]
    compute_dtype = meta["compute_dtype"]

    B = x.shape[0]
    assert x.shape[1] == D_in
    TB, Bp = _choose_batch_tiling(B, block_b)

    # x stays f32 and feature-unpadded (block last dim == full array dim);
    # only batch rows are padded when B is not a multiple of the tile.
    xp = x if Bp == B else jnp.pad(x, ((0, Bp - B), (0, 0)))

    cdt = jnp.dtype(compute_dtype).itemsize
    # Actual VMEM footprint: single-buffered weights/biases, double-buffered
    # x / out tiles, plus in-kernel intermediates; +25% headroom.
    vmem_need = (
        (D_in * Hp + Hp * Cp) * cdt            # weights (Buffered(1))
        + (Hp + Cp) * 4                        # biases  (Buffered(1))
        + 2 * TB * D_in * 4                    # x tiles (f32, double-buffered)
        + 2 * TB * Cp * 4                      # out tiles (f32, double-buffered)
        + TB * D_in * cdt                      # bf16 cast of x tile
        + TB * h_chunk * (4 + cdt)             # h slab (f32) + bf16 cast
        + TB * Cp * 4                          # f32 accumulator
    )
    vmem_limit = min(max(int(vmem_need * 1.25), 16 * 1024 * 1024),
                     100 * 1024 * 1024)

    cost = pl.CostEstimate(
        flops=2 * Bp * (D_in * Hp + Hp * Cp),
        transcendentals=0,
        bytes_accessed=(Bp * D_in * 4 + (D_in * Hp + Hp * Cp) * cdt
                        + (Hp + Cp) * 4 + Bp * Cp * 4),
    )

    kernel = functools.partial(simplenet_kernel, h_chunk=h_chunk,
                               n_h_chunks=n_h_chunks,
                               compute_dtype=compute_dtype)

    out = pl.pallas_call(
        kernel,
        out_shape=jax.ShapeDtypeStruct((Bp, Cp), jnp.float32),
        grid=(Bp // TB,),
        in_specs=[
            # x: tiled over batch, f32, cast to bf16 inside the kernel.
            pl.BlockSpec((TB, D_in), lambda i: (i, 0)),
            # Grid-invariant weights/biases: VMEM-resident, single-buffered.
            pl.BlockSpec((D_in, Hp), lambda i: (0, 0),
                         pipeline_mode=pl.Buffered(1)),
            pl.BlockSpec((1, Hp), lambda i: (0, 0),
                         pipeline_mode=pl.Buffered(1)),
            pl.BlockSpec((Hp, Cp), lambda i: (0, 0),
                         pipeline_mode=pl.Buffered(1)),
            pl.BlockSpec((1, Cp), lambda i: (0, 0),
                         pipeline_mode=pl.Buffered(1)),
        ],
        out_specs=pl.BlockSpec((TB, Cp), lambda i: (i, 0)),
        compiler_params=pltpu.CompilerParams(
            dimension_semantics=("parallel",),
            vmem_limit_bytes=vmem_limit,
        ),
        cost_estimate=cost,
    )(xp, w1p, b1p, w2p, b2p)

    return out[:B, :C]


def init_linear_params(key, in_features, out_features):
    """Matches nn.Linear default init (uniform +/- 1/sqrt(fan_in)); weight is
    returned transposed as [in_features, out_features]."""
    kw, kb = jax.random.split(key)
    bound = 1.0 / (in_features ** 0.5)
    w = jax.random.uniform(
        kw, (in_features, out_features), jnp.float32, -bound, bound)
    b = jax.random.uniform(kb, (out_features,), jnp.float32, -bound, bound)
    return w, b


if __name__ == "__main__":
    input_size = 16
    hidden_size = 32
    num_classes = 8
    batch = 8

    key = jax.random.PRNGKey(0)
    kx, k1, k2 = jax.random.split(key, 3)

    x = jax.random.normal(kx, (batch, input_size), jnp.float32)
    w1, b1 = init_linear_params(k1, input_size, hidden_size)
    w2, b2 = init_linear_params(k2, hidden_size, num_classes)

    # Pad/cast weights once (hoisted out of the per-forward path).
    padded_params, meta = prepare_simplenet_params(w1, b1, w2, b2)

    out = simplenet_forward(x, padded_params, meta)
    out = jax.block_until_ready(out)
    assert out.shape == (batch, num_classes)

    # Reference with matched bf16 operand rounding / f32 accumulation.
    xb = x.astype(jnp.bfloat16)
    h_ref = jnp.maximum(
        jnp.dot(xb, w1.astype(jnp.bfloat16),
                preferred_element_type=jnp.float32) + b1, 0.0)
    ref_bf16 = jnp.dot(h_ref.astype(jnp.bfloat16), w2.astype(jnp.bfloat16),
                       preferred_element_type=jnp.float32) + b2
    assert jnp.allclose(out, ref_bf16, atol=1e-3, rtol=1e-3)

    # Sanity check against the pure-f32 semantics of the original nn.Module
    # (bf16 operands are an intentional, documented precision tradeoff).
    ref_f32 = jnp.maximum(x @ w1 + b1, 0.0) @ w2 + b2
    assert jnp.allclose(out, ref_f32, atol=3e-2, rtol=3e-2)

    print("KERNEL_OK")
</pallas_src>

<mosaic_0001>
module attributes {stable_mosaic.version = 11 : i64} {
  func.func @simplenet_kernel(%arg0: i32, %arg1: memref<16x16xf32, #tpu.memory_space<vmem>>, %arg2: memref<16x128xbf16, #tpu.memory_space<vmem>>, %arg3: memref<1x128xf32, #tpu.memory_space<vmem>>, %arg4: memref<128x128xbf16, #tpu.memory_space<vmem>>, %arg5: memref<1x128xf32, #tpu.memory_space<vmem>>, %arg6: memref<16x128xf32, #tpu.memory_space<vmem>>) attributes {dimension_semantics = [#tpu.dimension_semantics<parallel>], iteration_bounds = array<i64: 1>, scalar_prefetch = 0 : i64, scratch_operands = 0 : i64, tpu.core_type = #tpu.core_type<tc>, window_params = [{transform_indices = @transform_0, window_bounds = array<i64: 16, 16>}, {pipeline_mode = #tpu.pipeline_mode<synchronous>, transform_indices = @transform_1, window_bounds = array<i64: 16, 128>}, {pipeline_mode = #tpu.pipeline_mode<synchronous>, transform_indices = @transform_2, window_bounds = array<i64: 1, 128>}, {pipeline_mode = #tpu.pipeline_mode<synchronous>, transform_indices = @transform_3, window_bounds = array<i64: 128, 128>}, {pipeline_mode = #tpu.pipeline_mode<synchronous>, transform_indices = @transform_4, window_bounds = array<i64: 1, 128>}, {transform_indices = @transform_5, window_bounds = array<i64: 16, 128>}]} {
    %c0 = arith.constant 0 : index
    %c0_0 = arith.constant 0 : index
    %0 = vector.load %arg1[%c0, %c0_0] : memref<16x16xf32, #tpu.memory_space<vmem>>, vector<16x16xf32>
    %1 = arith.truncf %0 : vector<16x16xf32> to vector<16x16xbf16>
    %cst = arith.constant 0.000000e+00 : f32
    %2 = vector.broadcast %cst : f32 to vector<16x128xf32>
    %c0_i32 = arith.constant 0 : i32
    %3 = tpu.assume_multiple %c0_i32, 128 : i32
    %c0_1 = arith.constant 0 : index
    %4 = arith.index_cast %3 : i32 to index
    %5 = vector.load %arg2[%c0_1, %4] : memref<16x128xbf16, #tpu.memory_space<vmem>>, vector<16x128xbf16>
    %cst_2 = arith.constant dense<0.000000e+00> : vector<16x128xf32>
    %6 = tpu.matmul %1, %5, %cst_2 {dimension_numbers = #tpu.dot_dimension_numbers<[1], [0], [0], [1], [0, 0, 1, 1], [], []>} : vector<16x16xbf16>, vector<16x128xbf16>, vector<16x128xf32> -> vector<16x128xf32>
    %c0_3 = arith.constant 0 : index
    %7 = arith.index_cast %3 : i32 to index
    %8 = vector.load %arg3[%c0_3, %7] : memref<1x128xf32, #tpu.memory_space<vmem>>, vector<1x128xf32>
    %9 = vector.broadcast %8 : vector<1x128xf32> to vector<16x128xf32>
    %10 = arith.addf %6, %9 : vector<16x128xf32>
    %cst_4 = arith.constant 0.000000e+00 : f32
    %11 = vector.broadcast %cst_4 : f32 to vector<16x128xf32>
    %12 = arith.maximumf %10, %11 : vector<16x128xf32>
    %13 = arith.truncf %12 : vector<16x128xf32> to vector<16x128xbf16>
    %14 = arith.index_cast %3 : i32 to index
    %c0_5 = arith.constant 0 : index
    %15 = vector.load %arg4[%14, %c0_5] : memref<128x128xbf16, #tpu.memory_space<vmem>>, vector<128x128xbf16>
    %cst_6 = arith.constant dense<0.000000e+00> : vector<16x128xf32>
    %16 = tpu.matmul %13, %15, %cst_6 {dimension_numbers = #tpu.dot_dimension_numbers<[1], [0], [0], [1], [0, 0, 1, 1], [], []>} : vector<16x128xbf16>, vector<128x128xbf16>, vector<16x128xf32> -> vector<16x128xf32>
    %17 = arith.addf %2, %16 : vector<16x128xf32>
    %c0_7 = arith.constant 0 : index
    %c0_8 = arith.constant 0 : index
    %18 = vector.load %arg5[%c0_7, %c0_8] : memref<1x128xf32, #tpu.memory_space<vmem>>, vector<1x128xf32>
    %19 = vector.broadcast %18 : vector<1x128xf32> to vector<16x128xf32>
    %20 = arith.addf %17, %19 : vector<16x128xf32>
    %c0_9 = arith.constant 0 : index
    %c0_10 = arith.constant 0 : index
    %21 = vector.load %arg6[%c0_9, %c0_10] : memref<16x128xf32, #tpu.memory_space<vmem>>, vector<16x128xf32>
    tpu.vector_store %arg6[%c0_9, %c0_10], %20 {strides = array<i32>} : memref<16x128xf32, #tpu.memory_space<vmem>>, vector<16x128xf32>,
    return
  }
  func.func @transform_0(%arg0: i32) -> (i32, i32) {
    %c0_i32 = arith.constant 0 : i32
    %c0_i32_0 = arith.constant 0 : i32
    return %arg0, %c0_i32 : i32, i32
  }
  func.func @transform_1(%arg0: i32) -> (i32, i32) {
    %c0_i32 = arith.constant 0 : i32
    %c0_i32_0 = arith.constant 0 : i32
    %c0_i32_1 = arith.constant 0 : i32
    return %c0_i32, %c0_i32_0 : i32, i32
  }
  func.func @transform_2(%arg0: i32) -> (i32, i32) {
    %c0_i32 = arith.constant 0 : i32
    %c0_i32_0 = arith.constant 0 : i32
    %c0_i32_1 = arith.constant 0 : i32
    return %c0_i32, %c0_i32_0 : i32, i32
  }
  func.func @transform_3(%arg0: i32) -> (i32, i32) {
    %c0_i32 = arith.constant 0 : i32
    %c0_i32_0 = arith.constant 0 : i32
    %c0_i32_1 = arith.constant 0 : i32
    return %c0_i32, %c0_i32_0 : i32, i32
  }
  func.func @transform_4(%arg0: i32) -> (i32, i32) {
    %c0_i32 = arith.constant 0 : i32
    %c0_i32_0 = arith.constant 0 : i32
    %c0_i32_1 = arith.constant 0 : i32
    return %c0_i32, %c0_i32_0 : i32, i32
  }
  func.func @transform_5(%arg0: i32) -> (i32, i32) {
    %c0_i32 = arith.constant 0 : i32
    %c0_i32_0 = arith.constant 0 : i32
    return %arg0, %c0_i32 : i32, i32
  }
}

</mosaic_0001>

<bundles_post_ra>
// kernel: tpu_custom_call.1
= control target key start
LH: loop header
LB: loop body
LE: loop exit
PB: predicated region body
PF: predicated region fallthrough
CT: control target
= control target key end

     0   :  { %10 = vsyncpa [#allocation3], 0  ;;  %s479_s0 = inlined_call_operand.hbm [shape: f32[16,16], index: 0, kind: input, shape index: {}]   ;;  %s480_s1 = inlined_call_operand.hbm [shape: bf16[16,128], index: 1, kind: input, shape index: {}]   ;;  %s481_s2 = inlined_call_operand.vmem [shape: f32[1,128], index: 2, kind: input, shape index: {}]   ;;  %s482_s3 = inlined_call_operand.hbm [shape: bf16[128,128], index: 3, kind: input, shape index: {}]   ;;  %s483_s4 = inlined_call_operand.vmem [shape: f32[1,128], index: 4, kind: input, shape index: {}]   ;;  %s484_s5 = inlined_call_operand.hbm [shape: f32[16,128], index: 5, kind: output, shape index: {}]  }
   0x1   :  { %11 = vsyncpa [#allocation6], 0 }
   0x2   :  { %12 = vsyncpa [#allocation4], 0  ;;  %s415_s18 = smov [#allocation5]  }
   0x3   :  { %s30_s19 = sshll.u32 %s415_s18, 4  ;;  %s31_s19 = int_to_ptr.vmem [resolvable:$true] %s30_s19 }
   0x4   :  { %s337_s20 = scalar_lea.vmem %s31_s19, 128  ;;  %p342_p1 = scmp.lt.s32.totalorder %s31_s19, %s31_s19 }
   0x5   :  { %p338_p0 = scmp.ne.s32.totalorder %s31_s19, %s337_s20  ;;  %p343_p2 = scmp.lt.s32.totalorder %s337_s20, %s337_s20 }
   0x7   :  { %p344_p3 = por %p343_p2, %p342_p1 }
   0x9   :  { %p345_p4 = pnand %p344_p3, %p338_p0 }
   0xb   :  { %348 = shalt.err (!%p345_p4)
}
   0xc   :  { %s416_s21 = smov 64   ;;  %s417_s22 = smov 4  }
   0xd   :  { %36 = dma.hbm_to_vmem [thread:$0]  %s480_s1, 128, %s31_s19, [#allocation6], %s416_s21, %s416_s21, %s417_s22  }
   0xe   :  { %s418_s25 = smov [#allocation2]  }
   0xf   :  { %s18_s26 = sshll.u32 %s418_s25, 4  ;;  %s19_s26 = int_to_ptr.vmem [resolvable:$true] %s18_s26 }
  0x10   :  { %s357_s27 = scalar_lea.vmem %s19_s26, 256  ;;  %p362_p6 = scmp.lt.s32.totalorder %s19_s26, %s19_s26 }
  0x11   :  { %p358_p5 = scmp.ne.s32.totalorder %s19_s26, %s357_s27  ;;  %p363_p7 = scmp.lt.s32.totalorder %s357_s27, %s357_s27 }
  0x13   :  { %p364_p8 = por %p363_p7, %p362_p6 }
  0x15   :  { %p365_p9 = pnand %p364_p8, %p358_p5 }
  0x17   :  { %368 = shalt.err (!%p365_p9)
}
  0x18   :  { %s419_s28 = smov 128   ;;  %s420_s29 = smov 8  }
  0x19   :  { %24 = dma.hbm_to_vmem [thread:$0]  %s479_s0, 256, %s19_s26, [#allocation3], %s419_s28, %s419_s28, %s420_s29  }
  0x1a   :  { %s421_s1 = smov [#allocation7]  }
  0x1b   :  { %s44_s7 = sshll.u32 %s421_s1, 4  ;;  %s45_s7 = int_to_ptr.vmem [resolvable:$true] %s44_s7 }
  0x1c   :  { %s377_s8 = scalar_lea.vmem %s45_s7, 1024  ;;  %p382_p11 = scmp.lt.s32.totalorder %s45_s7, %s45_s7 }
  0x1d   :  { %p378_p10 = scmp.ne.s32.totalorder %s45_s7, %s377_s8  ;;  %p383_p12 = scmp.lt.s32.totalorder %s377_s8, %s377_s8 }
  0x1f   :  { %p384_p13 = por %p383_p12, %p382_p11 }
  0x21   :  { %p385_p0 = pnand %p384_p13, %p378_p10 }
  0x23   :  { %388 = shalt.err (!%p385_p0)
}
  0x24   :  { %50 = dma.hbm_to_vmem [thread:$0]  %s482_s3, 1024, %s45_s7, [#allocation6], %s416_s21, %s416_s21, %s417_s22  }
  0x25   :  { %409 = dma.done.wait [#allocation3], 256  }
  0x26   :  { %410 = vsyncadd [#allocation3], 4294967040 }
  0x27   :  { %411 = dma.done.wait [#allocation6], 1152  }
  0x28   :  { %412 = vsyncadd [#allocation6], 4294966144  ;;  %v422_v0 = vmov 0.0   ;;  %vm423_vm0 = vmmov 0   ;;  %v320_v1 = vld [vmem:[#allocation5] sm:$0xff]   ;;  %v63_v2 = vld [vmem:[#allocation2] sm:$0xff] }
  0x29   :  { %284 = vmatprep.subr.bf16.mxu0 %v422_v0  ;;  %286 = vmatprep.mubr.msk.bf16.mxu0 %vm423_vm0, %v422_v0  ;;  %v64_v3 = vld [vmem:[#allocation2 + $0x8] sm:$0xff]  ;;  %vm81_vm1 = vcmask 130048   ;;  %v321_v5 = vld [vmem:[#allocation7 + $0x38] sm:$0xff]   ;;  %v323_v7 = vld [vmem:[#allocation7 + $0x28] sm:$0xff]   ;;  %s424_s13 = smov [#allocation8]  }
  0x2a   :  { %290 = vmatprep.subr.bf16.mxu1 %v422_v0  ;;  %306 = vmatprep.mubr.msk.bf16.mxu1 %vm423_vm0, %v422_v0  ;;  %v65_v4 = vpack.c.bf16 %v64_v3, %v63_v2  ;;  %v322_v6 = vld [vmem:[#allocation7 + $0x30] sm:$0xff]   ;;  %v324_v8 = vld [vmem:[#allocation7 + $0x20] sm:$0xff]   ;;  %v325_v9 = vld [vmem:[#allocation7 + $0x18] sm:$0xff]   ;;  %s248_s14 = sshll.u32 %s424_s13, 4  ;;  %s249_s14 = int_to_ptr.vmem [resolvable:$true] %s248_s14 }
  0x2b   :  { %285 = vmatpush3.bf16.msra.mxu0 %v320_v1  ;;  %291 = vmatpush3.bf16.msra.mxu1 %v321_v5  ;;  %v326_v10 = vld [vmem:[#allocation7 + $0x10] sm:$0xff]   ;;  %v327_v11 = vld [vmem:[#allocation7 + $0x8] sm:$0xff]   ;;  %v328_v12 = vld [vmem:[#allocation7] sm:$0xff]   ;;  %p394_p2 = scmp.lt.s32.totalorder %s249_s14, %s249_s14 }
  0x2c   :  { %292 = vmatprep.subr.bf16.mxu1 %v422_v0  ;;  %v261_v13 = vld [vmem:[%s481_s2] ss:$0 sm:$0xff]  ;;  %s389_s2 = scalar_lea.vmem %s249_s14, 256 }
  0x2d   :  { %v264_v23 = vld [vmem:[%s483_s4] ss:$0 sm:$0xff]  ;;  %p390_p1 = scmp.ne.s32.totalorder %s249_s14, %s389_s2  ;;  %p395_p3 = scmp.lt.s32.totalorder %s389_s2, %s389_s2 }
  0x2e   :  { %287 = vmatmul.mubr.msk.bf16.vlgmr.msra.gmra.mxu0 %vm81_vm1, %v65_v4 }
  0x2f   :  { %293 = vmatpush3.bf16.msra.mxu1 %v322_v6  ;;  %p396_p4 = por %p395_p3, %p394_p2 }
  0x30   :  { %294 = vmatprep.subr.bf16.mxu1 %v422_v0 }
  0x31   :  { %p397_p5 = pnand %p396_p4, %p390_p1 }
  0x33   :  { %295 = vmatpush3.bf16.msra.mxu1 %v323_v7 }
  0x34   :  { %296 = vmatprep.subr.bf16.mxu1 %v422_v0 }
  0x37   :  { %297 = vmatpush3.bf16.msra.mxu1 %v324_v8 }
  0x38   :  { %298 = vmatprep.subr.bf16.mxu1 %v422_v0 }
  0x3b   :  { %299 = vmatpush3.bf16.msra.mxu1 %v325_v9 }
  0x3c   :  { %300 = vmatprep.subr.bf16.mxu1 %v422_v0 }
  0x3f   :  { %301 = vmatpush3.bf16.msra.mxu1 %v326_v10 }
  0x40   :  { %302 = vmatprep.subr.bf16.mxu1 %v422_v0 }
  0x43   :  { %303 = vmatpush3.bf16.msra.mxu1 %v327_v11 }
  0x44   :  { %304 = vmatprep.subr.bf16.mxu1 %v422_v0 }
  0x47   :  { %305 = vmatpush3.bf16.msra.mxu1 %v328_v12 }
  0xee   :  { %v119_v14 = vpop.f32.mrf.mxu0 }
  0xef   :  { %v120_v16 = vadd.f32 %v261_v13, %v119_v14 }
  0xf0   :  { %v288_v15 = vpop.f32.mrf.mxu0 }
  0xf1   :  { %v126_v20 = vmax.f32 %v120_v16, 0.0 }
  0xf2   :  { %v122_v17 = vpop.f32.mrf.mxu0 }
  0xf3   :  { %v123_v18 = vadd.f32 %v261_v13, %v122_v17 }
  0xf4   :  { %v289_v19 = vpop.f32.mrf.mxu0 }
  0xf5   :  { %v127_v21 = vmax.f32 %v123_v18, 0.0 }
  0xf7   :  { %v128_v22 = vpack.c.bf16 %v127_v21, %v126_v20 }
  0xf9   :  { %307 = vmatmul.mubr.bf16.vlgmr.msra.gmra.mxu1 %v128_v22 }
 0x1b9   :  { %v234_v24 = vpop.f32.mrf.mxu1 }
 0x1ba   :  { %v235_v25 = vadd.f32 %v264_v23, %v234_v24 }
 0x1bb   :  { %v308_v26 = vpop.f32.mrf.mxu1 }
 0x1bc   :  { %241 = vst [vmem:[#allocation8] sm:$0xff] %v235_v25 }
 0x1bd   :  { %v237_v27 = vpop.f32.mrf.mxu1 }
 0x1be   :  { %v238_v28 = vadd.f32 %v264_v23, %v237_v27 }
 0x1bf   :  { %v309_v29 = vpop.f32.mrf.mxu1 }
 0x1c0   :  { %242 = vst [vmem:[#allocation8 + $0x8] sm:$0xff] %v238_v28 }
 0x1c1   :  { %400 = shalt.err (!%p397_p5)
}
 0x1c2   :  { %254 = dma.vmem_to_hbm [thread:$0]  %s249_s14, 256, %s484_s5, [#allocation4], %s419_s28, %s419_s28, %s420_s29  }
 0x1c3   :  { %413 = dma.done.wait [#allocation4], 256  }
 0x1c4   :  { %414 = vsyncadd [#allocation4], 4294967040 }
 0x1c5   :  { %258 = vsyncpa [#allocation3], 1 }
 0x1c6   :  { %259 = vsyncpa [#allocation6], 1 }
 0x1c7   :  { %260 = vsyncpa [#allocation4], 1 }

</bundles_post_ra>
